<compile_context>
chip_gen: v7x
topology: tpu7x:2x2x1
jax: 0.10.0
libtpu: 0.0.40
codegen_flags: <defaults>
</compile_context>

<pallas_src>
import functools

import jax
import jax.numpy as jnp
from jax.experimental import pallas as pl
from jax.experimental.pallas import tpu as pltpu

LANE = 128     # vreg lane width (last dim)
SUBLANE = 8    # vreg sublane width (second-to-last dim)


def _round_up(n, m):
    return ((n + m - 1) // m) * m


def _pick_batch_tile(B):
    """Largest batch tile <= 1024 rows (amortizes ~0.35us/grid-step overhead),
    but once the batch is large keep >= 4 tiles so dimension_semantics=
    ("parallel",) can actually shard across v7x's two TensorCores."""
    b8 = _round_up(max(B, 1), SUBLANE)
    tb = min(1024, b8)
    if b8 >= 1024:
        tb = min(tb, max(SUBLANE, _round_up(pl.cdiv(b8, 4), SUBLANE)))
    return tb


def mlp_kernel(x_ref, w1_ref, b1_ref, w2_ref, b2_ref, w3_ref, b3_ref, o_ref):
    """Fused 3-layer MLP for one batch tile.

    Matmuls: bf16 operands on the MXU with f32 accumulation.
    Bias-add / ReLU: f32 on the VPU (works on v5e, which has no bf16 VPU).
    """
    # x is already bf16 (cast once in the wrapper, not per tile).
    h1 = jnp.dot(x_ref[...], w1_ref[...], preferred_element_type=jnp.float32)
    h1 = jnp.maximum(h1 + b1_ref[...], 0.0)

    h2 = jnp.dot(h1.astype(jnp.bfloat16), w2_ref[...],
                 preferred_element_type=jnp.float32)
    h2 = jnp.maximum(h2 + b2_ref[...], 0.0)

    # w3/b3 carry the real class width -> output stored at (TB, num_classes).
    out = jnp.dot(h2.astype(jnp.bfloat16), w3_ref[...],
                  preferred_element_type=jnp.float32)
    o_ref[...] = (out + b3_ref[...]).astype(o_ref.dtype)


@jax.jit
def neural_net_forward(x, padded_params):
    """Run the 3-layer MLP forward pass as a single Pallas kernel.

    x: (B, input_size) float32 (or bf16)
    padded_params: output of `pad_params_for_tpu`.
    returns: (B, num_classes) float32 logits.
    """
    w1, b1 = padded_params["w1"], padded_params["b1"]
    w2, b2 = padded_params["w2"], padded_params["b2"]
    w3, b3 = padded_params["w3"], padded_params["b3"]

    B, in_features = x.shape
    h_p = w1.shape[1]          # hidden size padded to 128 lanes
    num_classes = w3.shape[1]  # real class width (unpadded)

    TB = _pick_batch_tile(B)
    Bp = _round_up(B, TB)

    # bf16 input halves x DMA bytes; only the batch axis is (maybe) padded.
    x_p = x.astype(jnp.bfloat16)
    if Bp != B:
        x_p = jnp.pad(x_p, ((0, Bp - B), (0, 0)))

    grid = (Bp // TB,)

    # Grid-invariant operands: constant index_map keeps them VMEM-resident
    # across batch tiles (no per-step re-DMA).
    # TODO(synk): if hidden_size ever grows large, add
    #   pipeline_mode=pl.Buffered(1) here to single-buffer the weights
    #   (saves VMEM on v7x with zero perf cost since the index_map is const).
    def const_spec(a):
        return pl.BlockSpec(a.shape, lambda i: (0,) * a.ndim)

    flops = 2 * Bp * (in_features * h_p + h_p * h_p + h_p * num_classes)
    bytes_accessed = (
        x_p.size * x_p.dtype.itemsize
        + sum(a.size * a.dtype.itemsize for a in (w1, b1, w2, b2, w3, b3))
        + Bp * num_classes * 4
    )

    out = pl.pallas_call(
        mlp_kernel,
        out_shape=jax.ShapeDtypeStruct((Bp, num_classes), jnp.float32),
        grid=grid,
        in_specs=[
            # last dim == full array dim (32 / 128 / num_classes) is legal.
            pl.BlockSpec((TB, in_features), lambda i: (i, 0)),
            const_spec(w1), const_spec(b1),
            const_spec(w2), const_spec(b2),
            const_spec(w3), const_spec(b3),
        ],
        out_specs=pl.BlockSpec((TB, num_classes), lambda i: (i, 0)),
        compiler_params=pltpu.CompilerParams(
            dimension_semantics=("parallel",)),
        cost_estimate=pl.CostEstimate(
            flops=flops, transcendentals=0, bytes_accessed=bytes_accessed),
    )(x_p, w1, b1, w2, b2, w3, b3)

    # Only slice off padded batch rows (no-op / skipped when Bp == B).
    if Bp != B:
        out = out[:B]
    return out


def init_params(key, input_size, hidden_size, num_classes):
    """Deterministic parameter init (mimics nn.Linear's uniform init)."""
    ks = jax.random.split(key, 6)

    def linear(kw, kb, fan_in, fan_out):
        bound = 1.0 / jnp.sqrt(fan_in)
        # PyTorch stores weight as (out, in); we store its transpose (in, out).
        w = jax.random.uniform(kw, (fan_in, fan_out), jnp.float32, -bound, bound)
        b = jax.random.uniform(kb, (1, fan_out), jnp.float32, -bound, bound)
        return w, b

    w1, b1 = linear(ks[0], ks[1], input_size, hidden_size)
    w2, b2 = linear(ks[2], ks[3], hidden_size, hidden_size)
    w3, b3 = linear(ks[4], ks[5], hidden_size, num_classes)
    return {"w1": w1, "b1": b1, "w2": w2, "b2": b2, "w3": w3, "b3": b3}


def pad_params_for_tpu(params):
    """Zero-pad only the hidden (lane) dims to 128 and cast weights to bf16
    (MXU-native). Input feature dim and class dim stay at their real sizes;
    biases stay f32 (VPU add). Zero padding is exact for the real outputs."""
    def pad2(a, rows, cols):
        return jnp.pad(a, ((0, rows - a.shape[0]), (0, cols - a.shape[1])))

    in_f, h = params["w1"].shape
    c = params["w3"].shape[1]
    h_p = _round_up(h, LANE)

    return {
        "w1": pad2(params["w1"], in_f, h_p).astype(jnp.bfloat16),
        "b1": pad2(params["b1"], 1, h_p),
        "w2": pad2(params["w2"], h_p, h_p).astype(jnp.bfloat16),
        "b2": pad2(params["b2"], 1, h_p),
        "w3": pad2(params["w3"], h_p, c).astype(jnp.bfloat16),
        "b3": params["b3"],
    }


def reference_forward(x, params):
    """Pure-JAX reference mirroring the kernel's bf16-in / f32-accumulate math."""
    def lin(h, w, b):
        return jnp.dot(h.astype(jnp.bfloat16), w.astype(jnp.bfloat16),
                       preferred_element_type=jnp.float32) + b

    h = jnp.maximum(lin(x, params["w1"], params["b1"]), 0.0)
    h = jnp.maximum(lin(h, params["w2"], params["b2"]), 0.0)
    return lin(h, params["w3"], params["b3"])


if __name__ == "__main__":
    # Small shapes consistent with the original script: bag-of-words-ish input,
    # hidden_size = 8, a handful of intent classes.
    batch = 8
    input_size = 32
    hidden_size = 8
    num_classes = 4

    key = jax.random.PRNGKey(0)
    k_x, k_p = jax.random.split(key)
    x = jax.random.normal(k_x, (batch, input_size), dtype=jnp.float32)
    params = init_params(k_p, input_size, hidden_size, num_classes)
    padded_params = pad_params_for_tpu(params)

    out = neural_net_forward(x, padded_params)
    out = jax.block_until_ready(out)

    ref = reference_forward(x, params)
    assert out.shape == (batch, num_classes), out.shape
    max_err = float(jnp.max(jnp.abs(out - ref)))
    assert jnp.allclose(out, ref, atol=2e-3, rtol=2e-3), f"max_err={max_err}"

    print("KERNEL_OK")
</pallas_src>

<mosaic_0001>
module attributes {stable_mosaic.version = 11 : i64} {
  func.func @mlp_kernel(%arg0: i32, %arg1: memref<8x32xbf16, #tpu.memory_space<vmem>>, %arg2: memref<32x128xbf16, #tpu.memory_space<vmem>>, %arg3: memref<1x128xf32, #tpu.memory_space<vmem>>, %arg4: memref<128x128xbf16, #tpu.memory_space<vmem>>, %arg5: memref<1x128xf32, #tpu.memory_space<vmem>>, %arg6: memref<128x4xbf16, #tpu.memory_space<vmem>>, %arg7: memref<1x4xf32, #tpu.memory_space<vmem>>, %arg8: memref<8x4xf32, #tpu.memory_space<vmem>>) attributes {dimension_semantics = [#tpu.dimension_semantics<parallel>], iteration_bounds = array<i64: 1>, scalar_prefetch = 0 : i64, scratch_operands = 0 : i64, tpu.core_type = #tpu.core_type<tc>, window_params = [{transform_indices = @transform_0, window_bounds = array<i64: 8, 32>}, {pipeline_mode = #tpu.pipeline_mode<synchronous>, transform_indices = @transform_1, window_bounds = array<i64: 32, 128>}, {pipeline_mode = #tpu.pipeline_mode<synchronous>, transform_indices = @transform_2, window_bounds = array<i64: 1, 128>}, {pipeline_mode = #tpu.pipeline_mode<synchronous>, transform_indices = @transform_3, window_bounds = array<i64: 128, 128>}, {pipeline_mode = #tpu.pipeline_mode<synchronous>, transform_indices = @transform_4, window_bounds = array<i64: 1, 128>}, {pipeline_mode = #tpu.pipeline_mode<synchronous>, transform_indices = @transform_5, window_bounds = array<i64: 128, 4>}, {pipeline_mode = #tpu.pipeline_mode<synchronous>, transform_indices = @transform_6, window_bounds = array<i64: 1, 4>}, {transform_indices = @transform_7, window_bounds = array<i64: 8, 4>}]} {
    %c0 = arith.constant 0 : index
    %c0_0 = arith.constant 0 : index
    %0 = vector.load %arg1[%c0, %c0_0] : memref<8x32xbf16, #tpu.memory_space<vmem>>, vector<8x32xbf16>
    %c0_1 = arith.constant 0 : index
    %c0_2 = arith.constant 0 : index
    %1 = vector.load %arg2[%c0_1, %c0_2] : memref<32x128xbf16, #tpu.memory_space<vmem>>, vector<32x128xbf16>
    %cst = arith.constant dense<0.000000e+00> : vector<8x128xf32>
    %2 = tpu.matmul %0, %1, %cst {dimension_numbers = #tpu.dot_dimension_numbers<[1], [0], [0], [1], [0, 0, 1, 1], [], []>} : vector<8x32xbf16>, vector<32x128xbf16>, vector<8x128xf32> -> vector<8x128xf32>
    %c0_3 = arith.constant 0 : index
    %c0_4 = arith.constant 0 : index
    %3 = vector.load %arg3[%c0_3, %c0_4] : memref<1x128xf32, #tpu.memory_space<vmem>>, vector<1x128xf32>
    %4 = vector.broadcast %3 : vector<1x128xf32> to vector<8x128xf32>
    %5 = arith.addf %2, %4 : vector<8x128xf32>
    %cst_5 = arith.constant 0.000000e+00 : f32
    %6 = vector.broadcast %cst_5 : f32 to vector<8x128xf32>
    %7 = arith.maximumf %5, %6 : vector<8x128xf32>
    %8 = arith.truncf %7 : vector<8x128xf32> to vector<8x128xbf16>
    %c0_6 = arith.constant 0 : index
    %c0_7 = arith.constant 0 : index
    %9 = vector.load %arg4[%c0_6, %c0_7] : memref<128x128xbf16, #tpu.memory_space<vmem>>, vector<128x128xbf16>
    %cst_8 = arith.constant dense<0.000000e+00> : vector<8x128xf32>
    %10 = tpu.matmul %8, %9, %cst_8 {dimension_numbers = #tpu.dot_dimension_numbers<[1], [0], [0], [1], [0, 0, 1, 1], [], []>} : vector<8x128xbf16>, vector<128x128xbf16>, vector<8x128xf32> -> vector<8x128xf32>
    %c0_9 = arith.constant 0 : index
    %c0_10 = arith.constant 0 : index
    %11 = vector.load %arg5[%c0_9, %c0_10] : memref<1x128xf32, #tpu.memory_space<vmem>>, vector<1x128xf32>
    %12 = vector.broadcast %11 : vector<1x128xf32> to vector<8x128xf32>
    %13 = arith.addf %10, %12 : vector<8x128xf32>
    %cst_11 = arith.constant 0.000000e+00 : f32
    %14 = vector.broadcast %cst_11 : f32 to vector<8x128xf32>
    %15 = arith.maximumf %13, %14 : vector<8x128xf32>
    %16 = arith.truncf %15 : vector<8x128xf32> to vector<8x128xbf16>
    %c0_12 = arith.constant 0 : index
    %c0_13 = arith.constant 0 : index
    %17 = vector.load %arg6[%c0_12, %c0_13] : memref<128x4xbf16, #tpu.memory_space<vmem>>, vector<128x4xbf16>
    %cst_14 = arith.constant dense<0.000000e+00> : vector<8x4xf32>
    %18 = tpu.matmul %16, %17, %cst_14 {dimension_numbers = #tpu.dot_dimension_numbers<[1], [0], [0], [1], [0, 0, 1, 1], [], []>} : vector<8x128xbf16>, vector<128x4xbf16>, vector<8x4xf32> -> vector<8x4xf32>
    %c0_15 = arith.constant 0 : index
    %c0_16 = arith.constant 0 : index
    %19 = vector.load %arg7[%c0_15, %c0_16] : memref<1x4xf32, #tpu.memory_space<vmem>>, vector<1x4xf32>
    %20 = vector.broadcast %19 : vector<1x4xf32> to vector<8x4xf32>
    %21 = arith.addf %18, %20 : vector<8x4xf32>
    %c0_17 = arith.constant 0 : index
    %c0_18 = arith.constant 0 : index
    %22 = vector.load %arg8[%c0_17, %c0_18] : memref<8x4xf32, #tpu.memory_space<vmem>>, vector<8x4xf32>
    tpu.vector_store %arg8[%c0_17, %c0_18], %21 {strides = array<i32>} : memref<8x4xf32, #tpu.memory_space<vmem>>, vector<8x4xf32>,
    return
  }
  func.func @transform_0(%arg0: i32) -> (i32, i32) {
    %c0_i32 = arith.constant 0 : i32
    %c0_i32_0 = arith.constant 0 : i32
    return %arg0, %c0_i32 : i32, i32
  }
  func.func @transform_1(%arg0: i32) -> (i32, i32) {
    %c0_i32 = arith.constant 0 : i32
    %c0_i32_0 = arith.constant 0 : i32
    %c0_i32_1 = arith.constant 0 : i32
    return %c0_i32, %c0_i32_0 : i32, i32
  }
  func.func @transform_2(%arg0: i32) -> (i32, i32) {
    %c0_i32 = arith.constant 0 : i32
    %c0_i32_0 = arith.constant 0 : i32
    %c0_i32_1 = arith.constant 0 : i32
    return %c0_i32, %c0_i32_0 : i32, i32
  }
  func.func @transform_3(%arg0: i32) -> (i32, i32) {
    %c0_i32 = arith.constant 0 : i32
    %c0_i32_0 = arith.constant 0 : i32
    %c0_i32_1 = arith.constant 0 : i32
    return %c0_i32, %c0_i32_0 : i32, i32
  }
  func.func @transform_4(%arg0: i32) -> (i32, i32) {
    %c0_i32 = arith.constant 0 : i32
    %c0_i32_0 = arith.constant 0 : i32
    %c0_i32_1 = arith.constant 0 : i32
    return %c0_i32, %c0_i32_0 : i32, i32
  }
  func.func @transform_5(%arg0: i32) -> (i32, i32) {
    %c0_i32 = arith.constant 0 : i32
    %c0_i32_0 = arith.constant 0 : i32
    %c0_i32_1 = arith.constant 0 : i32
    return %c0_i32, %c0_i32_0 : i32, i32
  }
  func.func @transform_6(%arg0: i32) -> (i32, i32) {
    %c0_i32 = arith.constant 0 : i32
    %c0_i32_0 = arith.constant 0 : i32
    %c0_i32_1 = arith.constant 0 : i32
    return %c0_i32, %c0_i32_0 : i32, i32
  }
  func.func @transform_7(%arg0: i32) -> (i32, i32) {
    %c0_i32 = arith.constant 0 : i32
    %c0_i32_0 = arith.constant 0 : i32
    return %arg0, %c0_i32 : i32, i32
  }
}

</mosaic_0001>

<bundles_post_ra>
// kernel: neural_net_forward.1
= control target key start
LH: loop header
LB: loop body
LE: loop exit
PB: predicated region body
PF: predicated region fallthrough
CT: control target
= control target key end

     0   :  { %v438_v0 = vmov 0.0   ;;  %vm439_vm0 = vmmov 0   ;;  %vm51_vm1 = vcmask 261120   ;;  %vm321_vm2 = vcmask 31744   ;;  %s573_s1 = inlined_call_operand.vmem [shape: bf16[32,128], index: 1, kind: input, shape index: {}]   ;;  %s574_s3 = inlined_call_operand.vmem [shape: bf16[128,128], index: 3, kind: input, shape index: {}]   ;;  %s575_s0 = inlined_call_operand.vmem [shape: bf16[8,32], index: 0, kind: input, shape index: {}]   ;;  %s576_s5 = inlined_call_operand.vmem [shape: bf16[128,4], index: 5, kind: input, shape index: {}]   ;;  %s577_s2 = inlined_call_operand.vmem [shape: f32[1,128], index: 2, kind: input, shape index: {}]   ;;  %s578_s4 = inlined_call_operand.vmem [shape: f32[1,128], index: 4, kind: input, shape index: {}]   ;;  %s579_s6 = inlined_call_operand.vmem [shape: f32[1,4], index: 6, kind: input, shape index: {}]   ;;  %s580_s7 = inlined_call_operand.vmem [shape: f32[8,4], index: 7, kind: output, shape index: {}]  }
   0x1   :  { %370 = vmatprep.subr.bf16.mxu0 %v438_v0  ;;  %v420_v1 = vld [vmem:[%s573_s1] sm:$0xff]   ;;  %374 = vmatprep.mubr.msk.bf16.mxu0 %vm439_vm0, %v438_v0  ;;  %v421_v2 = vld [vmem:[%s573_s1 + $0x8] sm:$0xff]   ;;  %v424_v6 = vld [vmem:[%s574_s3 + $0x10] sm:$0xff]  }
   0x2   :  { %378 = vmatprep.subr.bf16.mxu1 %v438_v0  ;;  %394 = vmatprep.mubr.msk.bf16.mxu1 %vm439_vm0, %v438_v0  ;;  %v422_v3 = vld [vmem:[%s574_s3] sm:$0xff]   ;;  %v423_v4 = vld [vmem:[%s574_s3 + $0x8] sm:$0xff]   ;;  %v425_v7 = vld [vmem:[%s574_s3 + $0x18] sm:$0xff]  }
   0x3   :  { %371 = vmatpush3.bf16.msra.mxu0 %v420_v1  ;;  %379 = vmatpush3.bf16.msra.mxu1 %v422_v3  ;;  %v27_v5 = vld [vmem:[%s575_s0] sm:$0xf]  ;;  %v427_v9 = vld [vmem:[%s574_s3 + $0x28] sm:$0xff]   ;;  %v428_v10 = vld [vmem:[%s574_s3 + $0x30] sm:$0xff]  }
   0x4   :  { %372 = vmatprep.subr.bf16.mxu0 %v438_v0  ;;  %380 = vmatprep.subr.bf16.mxu1 %v438_v0  ;;  %v426_v8 = vld [vmem:[%s574_s3 + $0x20] sm:$0xff]   ;;  %v429_v11 = vld [vmem:[%s574_s3 + $0x38] sm:$0xff]   ;;  %v431_v13 = vld [vmem:[%s576_s5 + $0x8] sm:$0xff]  }
   0x5   :  { %v430_v12 = vld [vmem:[%s576_s5] sm:$0xff]   ;;  %v432_v14 = vld [vmem:[%s576_s5 + $0x10] sm:$0xff]   ;;  %v433_v15 = vld [vmem:[%s576_s5 + $0x18] sm:$0xff]  }
   0x6   :  { %v434_v16 = vld [vmem:[%s576_s5 + $0x20] sm:$0xff]   ;;  %v435_v17 = vld [vmem:[%s576_s5 + $0x28] sm:$0xff]   ;;  %v436_v26 = vld [vmem:[%s576_s5 + $0x30] sm:$0xff]  }
   0x7   :  { %373 = vmatpush3.bf16.msra.mxu0 %v421_v2  ;;  %381 = vmatpush3.bf16.msra.mxu1 %v423_v4  ;;  %v327_v18 = vld [vmem:[%s577_s2] ss:$0 sm:$0xff]  ;;  %v437_v27 = vld [vmem:[%s576_s5 + $0x38] sm:$0xff]  }
   0x8   :  { %398 = vmatprep.subr.bf16.mxu0 %v438_v0  ;;  %382 = vmatprep.subr.bf16.mxu1 %v438_v0  ;;  %v331_v28 = vld [vmem:[%s578_s4] ss:$0 sm:$0xff] }
   0x9   :  { %v340_v36 = vld [vmem:[%s579_s6] ss:$0 sm:$0xff] }
   0xa   :  { %375 = vmatmul.mubr.msk.bf16.vlgmr.msra.gmra.mrb[0].mxu0 %vm51_vm1, %v27_v5 }
   0xb   :  { %414 = vmatprep.mubr.msk.bf16.mxu0 %vm439_vm0, %v438_v0  ;;  %383 = vmatpush3.bf16.msra.mxu1 %v424_v6 }
   0xc   :  { %384 = vmatprep.subr.bf16.mxu1 %v438_v0  ;;  %399 = vmatpush3.bf16.msra.mxu0 %v430_v12 }
   0xd   :  { %400 = vmatprep.subr.bf16.mxu0 %v438_v0 }
   0xf   :  { %385 = vmatpush3.bf16.msra.mxu1 %v425_v7 }
  0x10   :  { %386 = vmatprep.subr.bf16.mxu1 %v438_v0  ;;  %401 = vmatpush3.bf16.msra.mxu0 %v431_v13 }
  0x11   :  { %402 = vmatprep.subr.bf16.mxu0 %v438_v0 }
  0x13   :  { %387 = vmatpush3.bf16.msra.mxu1 %v426_v8 }
  0x14   :  { %388 = vmatprep.subr.bf16.mxu1 %v438_v0  ;;  %403 = vmatpush3.bf16.msra.mxu0 %v432_v14 }
  0x15   :  { %404 = vmatprep.subr.bf16.mxu0 %v438_v0 }
  0x17   :  { %389 = vmatpush3.bf16.msra.mxu1 %v427_v9 }
  0x18   :  { %390 = vmatprep.subr.bf16.mxu1 %v438_v0  ;;  %405 = vmatpush3.bf16.msra.mxu0 %v433_v15 }
  0x19   :  { %406 = vmatprep.subr.bf16.mxu0 %v438_v0 }
  0x1b   :  { %391 = vmatpush3.bf16.msra.mxu1 %v428_v10 }
  0x1c   :  { %392 = vmatprep.subr.bf16.mxu1 %v438_v0  ;;  %407 = vmatpush3.bf16.msra.mxu0 %v434_v16 }
  0x1d   :  { %408 = vmatprep.subr.bf16.mxu0 %v438_v0 }
  0x1f   :  { %393 = vmatpush3.bf16.msra.mxu1 %v429_v11 }
  0x20   :  { %409 = vmatpush3.bf16.msra.mxu0 %v435_v17 }
  0x21   :  { %410 = vmatprep.subr.bf16.mxu0 %v438_v0 }
  0x24   :  { %411 = vmatpush3.bf16.msra.mxu0 %v436_v26 }
  0x25   :  { %412 = vmatprep.subr.bf16.mxu0 %v438_v0 }
  0x28   :  { %413 = vmatpush3.bf16.msra.mxu0 %v437_v27 }
  0xdd   :  { %v89_v19 = vpop.f32.mrb[0].mxu0 }
  0xde   :  { %v90_v20 = vadd.f32 %v327_v18, %v89_v19  ;;  %v376_v21 = vpop.f32.mrb[1].mxu0 }
  0xdf   :  { %v92_v22 = vpop.f32.mrb[2].mxu0 }
  0xe0   :  { %v95_v23 = vmax.f32 %v90_v20, 0.0  ;;  %v377_v24 = vpop.f32.mrb[3].mxu0 }
  0xe2   :  { %v96_v25 = vpack.c.bf16 %v95_v23, %v95_v23 }
  0xe4   :  { %395 = vmatmul.mubr.bf16.vlgmr.msra.gmra.mrb[0].mxu1 %v96_v25 }
 0x1b7   :  { %v202_v29 = vpop.f32.mrb[0].mxu1 }
 0x1b8   :  { %v203_v30 = vadd.f32 %v331_v28, %v202_v29  ;;  %v396_v31 = vpop.f32.mrb[1].mxu1 }
 0x1b9   :  { %v205_v32 = vpop.f32.mrb[2].mxu1 }
 0x1ba   :  { %v208_v33 = vmax.f32 %v203_v30, 0.0  ;;  %v397_v34 = vpop.f32.mrb[3].mxu1 }
 0x1bc   :  { %v209_v35 = vpack.c.bf16 %v208_v33, %v208_v33 }
 0x1be   :  { %415 = vmatmul.mubr.bf16.vlgmr.msra.gmra.mrb[4].mxu0 %v209_v35 }
 0x291   :  { %v315_v37 = vpop.f32.mrb[4].mxu0 }
 0x292   :  { %v316_v38 = vadd.f32 %v340_v36, %v315_v37  ;;  %v416_v39 = vpop.f32.mrb[5].mxu0 }
 0x293   :  { %v318_v40 = vpop.f32.mrb[6].mxu0 }
 0x294   :  { %322 = vst.msk [vmem:[%s580_s7] sm:$0xff] %vm321_vm2, %v316_v38  ;;  %v417_v41 = vpop.f32.mrb[7].mxu0 }

</bundles_post_ra>
